<compile_context>
chip_gen: v7x
topology: tpu7x:2x2x1
jax: 0.10.0
libtpu: 0.0.40
codegen_flags: <defaults>
</compile_context>

<pallas_src>
import functools

import jax
import jax.numpy as jnp
import numpy as np
from jax.experimental import pallas as pl
from jax.experimental.pallas import tpu as pltpu


LANE = 128


def _round_up(x, m):
    return (x + m - 1) // m * m


def _pad2(w, rows, cols):
    return jnp.pad(w, ((0, rows - w.shape[0]), (0, cols - w.shape[1])))


# --------------------------------------------------------------------------- kernel
def decoder_kernel(x_ref, h0_ref, c0_ref, w_lstm_ref, w_misc_ref, b_ref,
                   pred_ref, h_out_ref, c_out_ref, *, num_layers, hp, vp):
    L, HP, VP = num_layers, hp, vp

    def dot(a, b):
        # bf16 MXU matmul, f32 accumulation.  Weights are already bf16; activations
        # are cast at the dot input only (state math stays f32).
        return jnp.dot(a.astype(jnp.bfloat16), b, preferred_element_type=jnp.float32)

    def brow(r, width):                       # (1, width) f32 bias row, broadcast over B
        return b_ref[r:r + 1, 0:width]

    # Load the pre-step state once; all reads happen before the aliased writes below.
    h0 = h0_ref[...]                          # (L, B, HP) f32
    c0 = c0_ref[...]                          # (L, B, HP) f32

    # ---------------- stacked LSTM, one time step (eval mode) ----------------
    layer_in = x_ref[...]                     # (B, HP) f32
    h_new, c_new = [], []
    for l in range(L):                        # L small & static
        # fused gate matmul: [layer_in | h_prev] @ [W_ih; W_hh]  (128-aligned concat)
        xin = jnp.concatenate([layer_in, h0[l]], axis=1)          # (B, 2*HP)
        gates = dot(xin, w_lstm_ref[l])                           # (B, 4*HP) f32
        # 128-lane-aligned gate slices; biases (b_ih + b_hh) added per gate.
        i_g = jax.nn.sigmoid(gates[:, 0 * HP:1 * HP] + brow(3 + 4 * l + 0, HP))
        f_g = jax.nn.sigmoid(gates[:, 1 * HP:2 * HP] + brow(3 + 4 * l + 1, HP))
        g_g = jnp.tanh(gates[:, 2 * HP:3 * HP] + brow(3 + 4 * l + 2, HP))
        o_g = jax.nn.sigmoid(gates[:, 3 * HP:4 * HP] + brow(3 + 4 * l + 3, HP))
        c = f_g * c0[l] + i_g * g_g           # padded lanes stay exactly 0
        h = o_g * jnp.tanh(c)
        h_new.append(h)
        c_new.append(c)
        layer_in = h
    out = layer_in                            # (B, HP) top-layer output

    # -------------- attention over the layer axis (uses pre-step h0) --------------
    w_att = w_misc_ref[0:HP, 0:HP]
    energy = (dot(h0.reshape(L * B_static(h0), HP), w_att) + brow(0, HP)
              ).reshape(L, -1, HP)
    scores = jnp.sum(out[None, :, :] * energy, axis=-1, keepdims=True)   # (L, B, 1)
    m = jnp.max(scores, axis=0, keepdims=True)
    exps = jnp.exp(scores - m)
    attn = exps / jnp.sum(exps, axis=0, keepdims=True)                   # (L, B, 1)
    context = attn[0] * h0[0]
    for l in range(1, L):
        context = context + attn[l] * h0[l]                              # (B, HP)

    # -------------- concat Linear (2H -> H), fused into ONE matmul --------------
    w_cat = w_misc_ref[HP:3 * HP, 0:HP]
    cat_in = jnp.concatenate([out, context], axis=1)                     # (B, 2*HP)
    concat_out = jnp.tanh(dot(cat_in, w_cat) + brow(1, HP))              # (B, HP)

    # -------------- final projection to (padded) vocab --------------
    w_fc = w_misc_ref[3 * HP:4 * HP, 0:VP]
    pred_ref[...] = dot(concat_out, w_fc) + brow(2, VP)                  # (B, VP) lane-dense

    # New recurrent state written last (all reads of h0/c0 are above -> safe w/ aliasing).
    h_out_ref[...] = jnp.stack(h_new)
    c_out_ref[...] = jnp.stack(c_new)


def B_static(h0):
    """Static batch extent of the (L, B, HP) state tile."""
    return h0.shape[1]


# ------------------------------------------------------------------- one-time packing
def pack_decoder_params(params):
    """Pre-transpose / fuse / zero-pad / bf16-cast all weights ONCE (hoisted out of the step)."""
    H = params["w_att"].shape[0]
    V = params["w_fc"].shape[0]
    L = params["w_ih"].shape[0]
    E = params["w_ih"].shape[2]
    HP = _round_up(max(H, E), LANE)
    VP = _round_up(V, LANE)
    W = max(HP, VP)

    # Fused, gate-padded LSTM weights: (L, 2*HP, 4*HP), bf16.
    # rows [0,HP)  -> layer input (x or lower-layer h);  rows [HP,2HP) -> h_prev.
    w_layers = []
    for l in range(L):
        w_ih_t = params["w_ih"][l].T          # (E, 4H)
        w_hh_t = params["w_hh"][l].T          # (H, 4H)
        gate_cols = []
        for g in range(4):                    # PyTorch gate order i, f, g, o
            top = _pad2(w_ih_t[:, g * H:(g + 1) * H], HP, HP)
            bot = _pad2(w_hh_t[:, g * H:(g + 1) * H], HP, HP)
            gate_cols.append(jnp.concatenate([top, bot], axis=0))   # (2*HP, HP)
        w_layers.append(jnp.concatenate(gate_cols, axis=1))         # (2*HP, 4*HP)
    w_lstm = jnp.stack(w_layers).astype(jnp.bfloat16)

    # Misc weight slab (all output dims padded to 128-multiples, same last dim), bf16:
    # rows [0,HP): w_att^T | [HP,2HP): w_cat^T (out part) | [2HP,3HP): w_cat^T (ctx part)
    # | [3HP,4HP): w_fc^T
    w_cat_t = params["w_cat"].T               # (2H, H): first H rows -> out, next H -> ctx
    w_misc = jnp.concatenate([
        _pad2(params["w_att"].T, HP, W),
        _pad2(w_cat_t[:H], HP, W),
        _pad2(w_cat_t[H:], HP, W),
        _pad2(params["w_fc"].T, HP, W),
    ], axis=0).astype(jnp.bfloat16)           # (4*HP, W)

    # Bias slab (f32, added post-accumulation):
    # row 0 b_att, row 1 b_cat, row 2 b_fc, rows 3+4l+g: (b_ih+b_hh) per gate.
    b_lstm = params["b_ih"] + params["b_hh"]  # (L, 4H), pre-summed
    rows = [_pad2(params["b_att"][None, :], 1, W),
            _pad2(params["b_cat"][None, :], 1, W),
            _pad2(params["b_fc"][None, :], 1, W)]
    for l in range(L):
        for g in range(4):
            rows.append(_pad2(b_lstm[l, g * H:(g + 1) * H][None, :], 1, W))
    b_all = jnp.concatenate(rows, axis=0).astype(jnp.float32)     # (3 + 4L, W)

    return {"embed": params["embed"].astype(jnp.float32),
            "w_lstm": w_lstm, "w_misc": w_misc, "b_all": b_all}


# ----------------------------------------------------------------------- step wrapper
@functools.partial(jax.jit, static_argnames=("hidden_size", "vocab_size"))
def decoder_rnn_forward(captions, enc_hidden, enc_cell, packed, *, hidden_size, vocab_size):
    """Pallas-backed forward step. Returns (predictions, hidden, cell) (unpadded)."""
    L, B, H = enc_hidden.shape
    E = packed["embed"].shape[1]
    HP = packed["w_lstm"].shape[1] // 2
    VP = _round_up(vocab_size, LANE)

    # Embedding lookup is glue (gather) -> plain JAX; then lane-pad activations/state.
    x = jnp.take(packed["embed"], captions, axis=0)                       # (B, E)
    x = jnp.pad(x, ((0, 0), (0, HP - E)))
    h0 = jnp.pad(enc_hidden.astype(jnp.float32), ((0, 0), (0, 0), (0, HP - H)))
    c0 = jnp.pad(enc_cell.astype(jnp.float32), ((0, 0), (0, 0), (0, HP - H)))

    vmem = pl.BlockSpec(memory_space=pltpu.MemorySpace.VMEM)
    kernel = functools.partial(decoder_kernel, num_layers=L, hp=HP, vp=VP)
    pred_p, h_out, c_out = pl.pallas_call(
        kernel,
        out_shape=(jax.ShapeDtypeStruct((B, VP), jnp.float32),
                   jax.ShapeDtypeStruct((L, B, HP), jnp.float32),
                   jax.ShapeDtypeStruct((L, B, HP), jnp.float32)),
        in_specs=[vmem] * 6,
        out_specs=(vmem, vmem, vmem),
        # Recurrent state updated in place (P8): enc_hidden->h_out, enc_cell->c_out.
        input_output_aliases={1: 1, 2: 2},
    )(x, h0, c0, packed["w_lstm"], packed["w_misc"], packed["b_all"])

    return (pred_p[:, :vocab_size], h_out[..., :H], c_out[..., :H])


# -------------------------------------------------------------------------- reference
def reference_forward(captions, enc_hidden, enc_cell, params):
    """Pure-JAX reference mirroring the PyTorch forward (eval mode)."""
    x = jnp.take(params["embed"], captions, axis=0)
    L, B, H = enc_hidden.shape
    layer_in = x
    h_new, c_new = [], []
    for l in range(L):
        gates = (layer_in @ params["w_ih"][l].T + params["b_ih"][l] +
                 enc_hidden[l] @ params["w_hh"][l].T + params["b_hh"][l])
        i_g = jax.nn.sigmoid(gates[:, :H])
        f_g = jax.nn.sigmoid(gates[:, H:2 * H])
        g_g = jnp.tanh(gates[:, 2 * H:3 * H])
        o_g = jax.nn.sigmoid(gates[:, 3 * H:])
        c = f_g * enc_cell[l] + i_g * g_g
        h = o_g * jnp.tanh(c)
        h_new.append(h)
        c_new.append(c)
        layer_in = h
    out = layer_in                                           # (B, H) == outputs.squeeze(0)
    energy = jnp.einsum("lbh,gh->lbg", enc_hidden, params["w_att"]) + params["b_att"]
    scores = jnp.sum(out[None] * energy, axis=2)             # (L, B)
    attn = jax.nn.softmax(scores.T, axis=1)                  # (B, L)
    context = jnp.einsum("bl,lbh->bh", attn, enc_hidden)     # (B, H)
    concat_in = jnp.concatenate([out, context], axis=1)      # (B, 2H)
    concat_out = jnp.tanh(concat_in @ params["w_cat"].T + params["b_cat"])
    pred = concat_out @ params["w_fc"].T + params["b_fc"]
    return pred, jnp.stack(h_new), jnp.stack(c_new)


def init_params(key, num_embeddings, embedding_dim, hidden_size, num_layers, vocab_size):
    ks = jax.random.split(key, 12)
    s = 0.1
    H, E, L, V = hidden_size, embedding_dim, num_layers, vocab_size
    return {
        "embed": s * jax.random.normal(ks[0], (num_embeddings, E), jnp.float32),
        "w_ih":  s * jax.random.normal(ks[1], (L, 4 * H, E), jnp.float32),
        "w_hh":  s * jax.random.normal(ks[2], (L, 4 * H, H), jnp.float32),
        "b_ih":  s * jax.random.normal(ks[3], (L, 4 * H), jnp.float32),
        "b_hh":  s * jax.random.normal(ks[4], (L, 4 * H), jnp.float32),
        "w_att": s * jax.random.normal(ks[5], (H, H), jnp.float32),
        "b_att": s * jax.random.normal(ks[6], (H,), jnp.float32),
        "w_cat": s * jax.random.normal(ks[7], (H, 2 * H), jnp.float32),
        "b_cat": s * jax.random.normal(ks[8], (H,), jnp.float32),
        "w_fc":  s * jax.random.normal(ks[9], (V, H), jnp.float32),
        "b_fc":  s * jax.random.normal(ks[10], (V,), jnp.float32),
    }


if __name__ == "__main__":
    # Module hyperparameters: input_size == embedding_dim == hidden_size so the
    # per-layer LSTM input weights can be stacked into one (L, 4H, H) tensor.
    num_embeddings = 64
    embedding_dim = 32
    hidden_size = 32
    num_layers = 2
    vocab_size = 64
    batch = 8

    key = jax.random.PRNGKey(0)
    k_param, k_cap, k_h, k_c = jax.random.split(key, 4)

    params = init_params(k_param, num_embeddings, embedding_dim,
                         hidden_size, num_layers, vocab_size)
    packed = pack_decoder_params(params)      # one-time weight fuse/transpose/pad/bf16

    captions = jax.random.randint(k_cap, (batch,), 0, num_embeddings, jnp.int32)
    enc_hidden = jax.random.normal(k_h, (num_layers, batch, hidden_size), jnp.float32)
    enc_cell = jax.random.normal(k_c, (num_layers, batch, hidden_size), jnp.float32)

    pred, h_out, c_out = decoder_rnn_forward(
        captions, enc_hidden, enc_cell, packed,
        hidden_size=hidden_size, vocab_size=vocab_size)
    jax.block_until_ready((pred, h_out, c_out))

    pred_ref, h_ref, c_ref = reference_forward(captions, enc_hidden, enc_cell, params)
    # bf16-weight / bf16-MXU single-pass precision -> 2e-2 tolerance (same as before).
    np.testing.assert_allclose(np.asarray(pred), np.asarray(pred_ref), rtol=2e-2, atol=2e-2)
    np.testing.assert_allclose(np.asarray(h_out), np.asarray(h_ref), rtol=2e-2, atol=2e-2)
    np.testing.assert_allclose(np.asarray(c_out), np.asarray(c_ref), rtol=2e-2, atol=2e-2)

    print("KERNEL_OK")
</pallas_src>

<mosaic_0001>
module attributes {stable_mosaic.version = 11 : i64} {
  func.func @decoder_kernel(%arg0: memref<8x128xf32, #tpu.memory_space<vmem>>, %arg1: memref<2x8x128xf32, #tpu.memory_space<vmem>>, %arg2: memref<2x8x128xf32, #tpu.memory_space<vmem>>, %arg3: memref<2x256x512xbf16, #tpu.memory_space<vmem>>, %arg4: memref<512x128xbf16, #tpu.memory_space<vmem>>, %arg5: memref<11x128xf32, #tpu.memory_space<vmem>>, %arg6: memref<8x128xf32, #tpu.memory_space<vmem>>, %arg7: memref<2x8x128xf32, #tpu.memory_space<vmem>>, %arg8: memref<2x8x128xf32, #tpu.memory_space<vmem>>) attributes {dimension_semantics = [], scalar_prefetch = 0 : i64, scratch_operands = 0 : i64, tpu.core_type = #tpu.core_type<tc>} {
    %c0 = arith.constant 0 : index
    %c0_0 = arith.constant 0 : index
    %c0_1 = arith.constant 0 : index
    %0 = vector.load %arg1[%c0, %c0_0, %c0_1] : memref<2x8x128xf32, #tpu.memory_space<vmem>>, vector<2x8x128xf32>
    %c0_2 = arith.constant 0 : index
    %c0_3 = arith.constant 0 : index
    %c0_4 = arith.constant 0 : index
    %1 = vector.load %arg2[%c0_2, %c0_3, %c0_4] : memref<2x8x128xf32, #tpu.memory_space<vmem>>, vector<2x8x128xf32>
    %c0_5 = arith.constant 0 : index
    %c0_6 = arith.constant 0 : index
    %2 = vector.load %arg0[%c0_5, %c0_6] : memref<8x128xf32, #tpu.memory_space<vmem>>, vector<8x128xf32>
    %3 = vector.extract_strided_slice %0 {offsets = [0, 0, 0], sizes = [1, 8, 128], strides = [1, 1, 1]} : vector<2x8x128xf32> to vector<1x8x128xf32>
    %4 = vector.shape_cast %3 : vector<1x8x128xf32> to vector<8x128xf32>
    %5 = tpu.concatenate %2, %4 in 1 : vector<8x128xf32>, vector<8x128xf32> -> vector<8x256xf32>
    %c0_7 = arith.constant 0 : index
    %c0_8 = arith.constant 0 : index
    %c0_9 = arith.constant 0 : index
    %6 = vector.load %arg3[%c0_7, %c0_8, %c0_9] : memref<2x256x512xbf16, #tpu.memory_space<vmem>>, vector<1x256x512xbf16>
    %7 = vector.shape_cast %6 : vector<1x256x512xbf16> to vector<256x512xbf16>
    %8 = arith.truncf %5 : vector<8x256xf32> to vector<8x256xbf16>
    %cst = arith.constant dense<0.000000e+00> : vector<8x512xf32>
    %9 = tpu.matmul %8, %7, %cst {dimension_numbers = #tpu.dot_dimension_numbers<[1], [0], [0], [1], [0, 0, 1, 1], [], []>} : vector<8x256xbf16>, vector<256x512xbf16>, vector<8x512xf32> -> vector<8x512xf32>
    %10 = vector.extract_strided_slice %9 {offsets = [0, 0], sizes = [8, 128], strides = [1, 1]} : vector<8x512xf32> to vector<8x128xf32>
    %c3 = arith.constant 3 : index
    %c0_10 = arith.constant 0 : index
    %11 = vector.load %arg5[%c3, %c0_10] : memref<11x128xf32, #tpu.memory_space<vmem>>, vector<1x128xf32>
    %12 = vector.broadcast %11 : vector<1x128xf32> to vector<8x128xf32>
    %13 = arith.addf %10, %12 : vector<8x128xf32>
    %14 = arith.negf %13 : vector<8x128xf32>
    %15 = math.exp %14 : vector<8x128xf32>
    %cst_11 = arith.constant 1.000000e+00 : f32
    %16 = vector.broadcast %cst_11 : f32 to vector<8x128xf32>
    %17 = arith.addf %16, %15 : vector<8x128xf32>
    %18 = arith.divf %16, %17 : vector<8x128xf32>
    %19 = vector.extract_strided_slice %9 {offsets = [0, 128], sizes = [8, 128], strides = [1, 1]} : vector<8x512xf32> to vector<8x128xf32>
    %c4 = arith.constant 4 : index
    %c0_12 = arith.constant 0 : index
    %20 = vector.load %arg5[%c4, %c0_12] : memref<11x128xf32, #tpu.memory_space<vmem>>, vector<1x128xf32>
    %21 = vector.broadcast %20 : vector<1x128xf32> to vector<8x128xf32>
    %22 = arith.addf %19, %21 : vector<8x128xf32>
    %23 = arith.negf %22 : vector<8x128xf32>
    %24 = math.exp %23 : vector<8x128xf32>
    %cst_13 = arith.constant 1.000000e+00 : f32
    %25 = vector.broadcast %cst_13 : f32 to vector<8x128xf32>
    %26 = arith.addf %25, %24 : vector<8x128xf32>
    %27 = arith.divf %25, %26 : vector<8x128xf32>
    %28 = vector.extract_strided_slice %9 {offsets = [0, 256], sizes = [8, 128], strides = [1, 1]} : vector<8x512xf32> to vector<8x128xf32>
    %c5 = arith.constant 5 : index
    %c0_14 = arith.constant 0 : index
    %29 = vector.load %arg5[%c5, %c0_14] : memref<11x128xf32, #tpu.memory_space<vmem>>, vector<1x128xf32>
    %30 = vector.broadcast %29 : vector<1x128xf32> to vector<8x128xf32>
    %31 = arith.addf %28, %30 : vector<8x128xf32>
    %32 = math.tanh %31 : vector<8x128xf32>
    %33 = vector.extract_strided_slice %9 {offsets = [0, 384], sizes = [8, 128], strides = [1, 1]} : vector<8x512xf32> to vector<8x128xf32>
    %c6 = arith.constant 6 : index
    %c0_15 = arith.constant 0 : index
    %34 = vector.load %arg5[%c6, %c0_15] : memref<11x128xf32, #tpu.memory_space<vmem>>, vector<1x128xf32>
    %35 = vector.broadcast %34 : vector<1x128xf32> to vector<8x128xf32>
    %36 = arith.addf %33, %35 : vector<8x128xf32>
    %37 = arith.negf %36 : vector<8x128xf32>
    %38 = math.exp %37 : vector<8x128xf32>
    %cst_16 = arith.constant 1.000000e+00 : f32
    %39 = vector.broadcast %cst_16 : f32 to vector<8x128xf32>
    %40 = arith.addf %39, %38 : vector<8x128xf32>
    %41 = arith.divf %39, %40 : vector<8x128xf32>
    %42 = vector.extract_strided_slice %1 {offsets = [0, 0, 0], sizes = [1, 8, 128], strides = [1, 1, 1]} : vector<2x8x128xf32> to vector<1x8x128xf32>
    %43 = vector.shape_cast %42 : vector<1x8x128xf32> to vector<8x128xf32>
    %44 = arith.mulf %27, %43 : vector<8x128xf32>
    %45 = arith.mulf %18, %32 : vector<8x128xf32>
    %46 = arith.addf %44, %45 : vector<8x128xf32>
    %47 = math.tanh %46 : vector<8x128xf32>
    %48 = arith.mulf %41, %47 : vector<8x128xf32>
    %49 = vector.extract_strided_slice %0 {offsets = [1, 0, 0], sizes = [1, 8, 128], strides = [1, 1, 1]} : vector<2x8x128xf32> to vector<1x8x128xf32>
    %50 = vector.shape_cast %49 : vector<1x8x128xf32> to vector<8x128xf32>
    %51 = tpu.concatenate %48, %50 in 1 : vector<8x128xf32>, vector<8x128xf32> -> vector<8x256xf32>
    %c1 = arith.constant 1 : index
    %c0_17 = arith.constant 0 : index
    %c0_18 = arith.constant 0 : index
    %52 = vector.load %arg3[%c1, %c0_17, %c0_18] : memref<2x256x512xbf16, #tpu.memory_space<vmem>>, vector<1x256x512xbf16>
    %53 = vector.shape_cast %52 : vector<1x256x512xbf16> to vector<256x512xbf16>
    %54 = arith.truncf %51 : vector<8x256xf32> to vector<8x256xbf16>
    %cst_19 = arith.constant dense<0.000000e+00> : vector<8x512xf32>
    %55 = tpu.matmul %54, %53, %cst_19 {dimension_numbers = #tpu.dot_dimension_numbers<[1], [0], [0], [1], [0, 0, 1, 1], [], []>} : vector<8x256xbf16>, vector<256x512xbf16>, vector<8x512xf32> -> vector<8x512xf32>
    %56 = vector.extract_strided_slice %55 {offsets = [0, 0], sizes = [8, 128], strides = [1, 1]} : vector<8x512xf32> to vector<8x128xf32>
    %c7 = arith.constant 7 : index
    %c0_20 = arith.constant 0 : index
    %57 = vector.load %arg5[%c7, %c0_20] : memref<11x128xf32, #tpu.memory_space<vmem>>, vector<1x128xf32>
    %58 = vector.broadcast %57 : vector<1x128xf32> to vector<8x128xf32>
    %59 = arith.addf %56, %58 : vector<8x128xf32>
    %60 = arith.negf %59 : vector<8x128xf32>
    %61 = math.exp %60 : vector<8x128xf32>
    %cst_21 = arith.constant 1.000000e+00 : f32
    %62 = vector.broadcast %cst_21 : f32 to vector<8x128xf32>
    %63 = arith.addf %62, %61 : vector<8x128xf32>
    %64 = arith.divf %62, %63 : vector<8x128xf32>
    %65 = vector.extract_strided_slice %55 {offsets = [0, 128], sizes = [8, 128], strides = [1, 1]} : vector<8x512xf32> to vector<8x128xf32>
    %c8 = arith.constant 8 : index
    %c0_22 = arith.constant 0 : index
    %66 = vector.load %arg5[%c8, %c0_22] : memref<11x128xf32, #tpu.memory_space<vmem>>, vector<1x128xf32>
    %67 = vector.broadcast %66 : vector<1x128xf32> to vector<8x128xf32>
    %68 = arith.addf %65, %67 : vector<8x128xf32>
    %69 = arith.negf %68 : vector<8x128xf32>
    %70 = math.exp %69 : vector<8x128xf32>
    %cst_23 = arith.constant 1.000000e+00 : f32
    %71 = vector.broadcast %cst_23 : f32 to vector<8x128xf32>
    %72 = arith.addf %71, %70 : vector<8x128xf32>
    %73 = arith.divf %71, %72 : vector<8x128xf32>
    %74 = vector.extract_strided_slice %55 {offsets = [0, 256], sizes = [8, 128], strides = [1, 1]} : vector<8x512xf32> to vector<8x128xf32>
    %c9 = arith.constant 9 : index
    %c0_24 = arith.constant 0 : index
    %75 = vector.load %arg5[%c9, %c0_24] : memref<11x128xf32, #tpu.memory_space<vmem>>, vector<1x128xf32>
    %76 = vector.broadcast %75 : vector<1x128xf32> to vector<8x128xf32>
    %77 = arith.addf %74, %76 : vector<8x128xf32>
    %78 = math.tanh %77 : vector<8x128xf32>
    %79 = vector.extract_strided_slice %55 {offsets = [0, 384], sizes = [8, 128], strides = [1, 1]} : vector<8x512xf32> to vector<8x128xf32>
    %c10 = arith.constant 10 : index
    %c0_25 = arith.constant 0 : index
    %80 = vector.load %arg5[%c10, %c0_25] : memref<11x128xf32, #tpu.memory_space<vmem>>, vector<1x128xf32>
    %81 = vector.broadcast %80 : vector<1x128xf32> to vector<8x128xf32>
    %82 = arith.addf %79, %81 : vector<8x128xf32>
    %83 = arith.negf %82 : vector<8x128xf32>
    %84 = math.exp %83 : vector<8x128xf32>
    %cst_26 = arith.constant 1.000000e+00 : f32
    %85 = vector.broadcast %cst_26 : f32 to vector<8x128xf32>
    %86 = arith.addf %85, %84 : vector<8x128xf32>
    %87 = arith.divf %85, %86 : vector<8x128xf32>
    %88 = vector.extract_strided_slice %1 {offsets = [1, 0, 0], sizes = [1, 8, 128], strides = [1, 1, 1]} : vector<2x8x128xf32> to vector<1x8x128xf32>
    %89 = vector.shape_cast %88 : vector<1x8x128xf32> to vector<8x128xf32>
    %90 = arith.mulf %73, %89 : vector<8x128xf32>
    %91 = arith.mulf %64, %78 : vector<8x128xf32>
    %92 = arith.addf %90, %91 : vector<8x128xf32>
    %93 = math.tanh %92 : vector<8x128xf32>
    %94 = arith.mulf %87, %93 : vector<8x128xf32>
    %c0_27 = arith.constant 0 : index
    %c0_28 = arith.constant 0 : index
    %95 = vector.load %arg4[%c0_27, %c0_28] : memref<512x128xbf16, #tpu.memory_space<vmem>>, vector<128x128xbf16>
    %96 = vector.shape_cast %0 : vector<2x8x128xf32> to vector<16x128xf32>
    %97 = arith.truncf %96 : vector<16x128xf32> to vector<16x128xbf16>
    %cst_29 = arith.constant dense<0.000000e+00> : vector<16x128xf32>
    %98 = tpu.matmul %97, %95, %cst_29 {dimension_numbers = #tpu.dot_dimension_numbers<[1], [0], [0], [1], [0, 0, 1, 1], [], []>} : vector<16x128xbf16>, vector<128x128xbf16>, vector<16x128xf32> -> vector<16x128xf32>
    %c0_30 = arith.constant 0 : index
    %c0_31 = arith.constant 0 : index
    %99 = vector.load %arg5[%c0_30, %c0_31] : memref<11x128xf32, #tpu.memory_space<vmem>>, vector<1x128xf32>
    %100 = vector.broadcast %99 : vector<1x128xf32> to vector<16x128xf32>
    %101 = arith.addf %98, %100 : vector<16x128xf32>
    %102 = vector.shape_cast %101 : vector<16x128xf32> to vector<2x8x128xf32>
    %103 = vector.shape_cast %94 : vector<8x128xf32> to vector<1x8x128xf32>
    %104 = vector.broadcast %103 : vector<1x8x128xf32> to vector<2x8x128xf32>
    %105 = arith.mulf %104, %102 : vector<2x8x128xf32>
    %cst_32 = arith.constant dense<0.000000e+00> : vector<2x8xf32>
    %106 = vector.multi_reduction <add>, %105, %cst_32 [2] : vector<2x8x128xf32> to vector<2x8xf32>
    %107 = vector.shape_cast %106 : vector<2x8xf32> to vector<2x8x1xf32>
    %cst_33 = arith.constant dense<0xFF800000> : vector<8x1xf32>
    %108 = vector.multi_reduction <maximumf>, %107, %cst_33 [0] : vector<2x8x1xf32> to vector<8x1xf32>
    %109 = vector.shape_cast %108 : vector<8x1xf32> to vector<1x8x1xf32>
    %110 = vector.broadcast %109 : vector<1x8x1xf32> to vector<2x8x1xf32>
    %111 = arith.subf %107, %110 : vector<2x8x1xf32>
    %112 = math.exp %111 : vector<2x8x1xf32>
    %cst_34 = arith.constant dense<0.000000e+00> : vector<8x1xf32>
    %113 = vector.multi_reduction <add>, %112, %cst_34 [0] : vector<2x8x1xf32> to vector<8x1xf32>
    %114 = vector.shape_cast %113 : vector<8x1xf32> to vector<1x8x1xf32>
    %115 = vector.broadcast %114 : vector<1x8x1xf32> to vector<2x8x1xf32>
    %116 = arith.divf %112, %115 : vector<2x8x1xf32>
    %117 = vector.extract_strided_slice %116 {offsets = [0, 0, 0], sizes = [1, 8, 1], strides = [1, 1, 1]} : vector<2x8x1xf32> to vector<1x8x1xf32>
    %118 = vector.shape_cast %117 : vector<1x8x1xf32> to vector<8x1xf32>
    %119 = vector.extract_strided_slice %0 {offsets = [0, 0, 0], sizes = [1, 8, 128], strides = [1, 1, 1]} : vector<2x8x128xf32> to vector<1x8x128xf32>
    %120 = vector.shape_cast %119 : vector<1x8x128xf32> to vector<8x128xf32>
    %121 = vector.broadcast %118 : vector<8x1xf32> to vector<8x128xf32>
    %122 = arith.mulf %121, %120 : vector<8x128xf32>
    %123 = vector.extract_strided_slice %116 {offsets = [1, 0, 0], sizes = [1, 8, 1], strides = [1, 1, 1]} : vector<2x8x1xf32> to vector<1x8x1xf32>
    %124 = vector.shape_cast %123 : vector<1x8x1xf32> to vector<8x1xf32>
    %125 = vector.extract_strided_slice %0 {offsets = [1, 0, 0], sizes = [1, 8, 128], strides = [1, 1, 1]} : vector<2x8x128xf32> to vector<1x8x128xf32>
    %126 = vector.shape_cast %125 : vector<1x8x128xf32> to vector<8x128xf32>
    %127 = vector.broadcast %124 : vector<8x1xf32> to vector<8x128xf32>
    %128 = arith.mulf %127, %126 : vector<8x128xf32>
    %129 = arith.addf %122, %128 : vector<8x128xf32>
    %c128 = arith.constant 128 : index
    %c0_35 = arith.constant 0 : index
    %130 = vector.load %arg4[%c128, %c0_35] : memref<512x128xbf16, #tpu.memory_space<vmem>>, vector<256x128xbf16>
    %131 = tpu.concatenate %94, %129 in 1 : vector<8x128xf32>, vector<8x128xf32> -> vector<8x256xf32>
    %132 = arith.truncf %131 : vector<8x256xf32> to vector<8x256xbf16>
    %cst_36 = arith.constant dense<0.000000e+00> : vector<8x128xf32>
    %133 = tpu.matmul %132, %130, %cst_36 {dimension_numbers = #tpu.dot_dimension_numbers<[1], [0], [0], [1], [0, 0, 1, 1], [], []>} : vector<8x256xbf16>, vector<256x128xbf16>, vector<8x128xf32> -> vector<8x128xf32>
    %c1_37 = arith.constant 1 : index
    %c0_38 = arith.constant 0 : index
    %134 = vector.load %arg5[%c1_37, %c0_38] : memref<11x128xf32, #tpu.memory_space<vmem>>, vector<1x128xf32>
    %135 = vector.broadcast %134 : vector<1x128xf32> to vector<8x128xf32>
    %136 = arith.addf %133, %135 : vector<8x128xf32>
    %137 = math.tanh %136 : vector<8x128xf32>
    %c384 = arith.constant 384 : index
    %c0_39 = arith.constant 0 : index
    %138 = vector.load %arg4[%c384, %c0_39] : memref<512x128xbf16, #tpu.memory_space<vmem>>, vector<128x128xbf16>
    %139 = arith.truncf %137 : vector<8x128xf32> to vector<8x128xbf16>
    %cst_40 = arith.constant dense<0.000000e+00> : vector<8x128xf32>
    %140 = tpu.matmul %139, %138, %cst_40 {dimension_numbers = #tpu.dot_dimension_numbers<[1], [0], [0], [1], [0, 0, 1, 1], [], []>} : vector<8x128xbf16>, vector<128x128xbf16>, vector<8x128xf32> -> vector<8x128xf32>
    %c2 = arith.constant 2 : index
    %c0_41 = arith.constant 0 : index
    %141 = vector.load %arg5[%c2, %c0_41] : memref<11x128xf32, #tpu.memory_space<vmem>>, vector<1x128xf32>
    %142 = vector.broadcast %141 : vector<1x128xf32> to vector<8x128xf32>
    %143 = arith.addf %140, %142 : vector<8x128xf32>
    %c0_42 = arith.constant 0 : index
    %c0_43 = arith.constant 0 : index
    %144 = vector.load %arg6[%c0_42, %c0_43] : memref<8x128xf32, #tpu.memory_space<vmem>>, vector<8x128xf32>
    tpu.vector_store %arg6[%c0_42, %c0_43], %143 {strides = array<i32>} : memref<8x128xf32, #tpu.memory_space<vmem>>, vector<8x128xf32>,
    %145 = vector.shape_cast %48 : vector<8x128xf32> to vector<1x8x128xf32>
    %146 = vector.shape_cast %94 : vector<8x128xf32> to vector<1x8x128xf32>
    %147 = tpu.concatenate %145, %146 in 0 : vector<1x8x128xf32>, vector<1x8x128xf32> -> vector<2x8x128xf32>
    %c0_44 = arith.constant 0 : index
    %c0_45 = arith.constant 0 : index
    %c0_46 = arith.constant 0 : index
    %148 = vector.load %arg7[%c0_44, %c0_45, %c0_46] : memref<2x8x128xf32, #tpu.memory_space<vmem>>, vector<2x8x128xf32>
    tpu.vector_store %arg7[%c0_44, %c0_45, %c0_46], %147 {strides = array<i32>} : memref<2x8x128xf32, #tpu.memory_space<vmem>>, vector<2x8x128xf32>,
    %149 = vector.shape_cast %46 : vector<8x128xf32> to vector<1x8x128xf32>
    %150 = vector.shape_cast %92 : vector<8x128xf32> to vector<1x8x128xf32>
    %151 = tpu.concatenate %149, %150 in 0 : vector<1x8x128xf32>, vector<1x8x128xf32> -> vector<2x8x128xf32>
    %c0_47 = arith.constant 0 : index
    %c0_48 = arith.constant 0 : index
    %c0_49 = arith.constant 0 : index
    %152 = vector.load %arg8[%c0_47, %c0_48, %c0_49] : memref<2x8x128xf32, #tpu.memory_space<vmem>>, vector<2x8x128xf32>
    tpu.vector_store %arg8[%c0_47, %c0_48, %c0_49], %151 {strides = array<i32>} : memref<2x8x128xf32, #tpu.memory_space<vmem>>, vector<2x8x128xf32>,
    return
  }
}

</mosaic_0001>

<bundles_post_ra>
// kernel: decoder_rnn_forward.1
= control target key start
LH: loop header
LB: loop body
LE: loop exit
PB: predicated region body
PF: predicated region fallthrough
CT: control target
= control target key end

     0   :  { %14 = vsyncpa [#allocation3], 0  ;;  %s2370_s0 = inlined_call_operand.vmem [shape: f32[8,128], index: 0, kind: input, shape index: {}]   ;;  %s2371_s1 = inlined_call_operand.vmem [shape: f32[2,8,128], index: 1, kind: input, shape index: {}, may-alias: {1,7}]   ;;  %s2372_s2 = inlined_call_operand.vmem [shape: f32[2,8,128], index: 2, kind: input, shape index: {}, may-alias: {2,8}]   ;;  %s2373_s3 = inlined_call_operand.hbm [shape: bf16[2,256,512], index: 3, kind: input, shape index: {}]   ;;  %s2374_s4 = inlined_call_operand.vmem [shape: bf16[512,128], index: 4, kind: input, shape index: {}]   ;;  %s2375_s5 = inlined_call_operand.vmem [shape: f32[11,128], index: 5, kind: input, shape index: {}]   ;;  %s2376_s6 = inlined_call_operand.hbm [shape: f32[8,128], index: 6, kind: output, shape index: {0}]   ;;  %s2377_s7 = inlined_call_operand.vmem [shape: f32[2,8,128], index: 7, kind: output, shape index: {1}, may-alias: {1,7}]   ;;  %s2378_s8 = inlined_call_operand.vmem [shape: f32[2,8,128], index: 8, kind: output, shape index: {2}, may-alias: {2,8}]  }
   0x1   :  { %15 = vsyncpa [#allocation4], 0  ;;  %s2100_s27 = smov [#allocation2]   ;;  %s2052_s9 = scalar_lea.hbm %s2373_s3, 16384 }
   0x2   :  { %s27_s28 = sshll.u32 %s2100_s27, 4  ;;  %p2053_p0 = scmp.ne.s32.totalorder %s2373_s3, %s2052_s9  ;;  %s28_s28 = int_to_ptr.vmem [resolvable:$true] %s27_s28 }
   0x3   :  { %p2056_p1 = scmp.lt.u32.totalorder %s2052_s9, %s2373_s3 }
   0x5   :  { %p2058_p2 = pnand %p2056_p1, %p2053_p0 }
   0x7   :  { %2061 = shalt.err (!%p2058_p2)
}
   0x8   :  { %s2062_s14 = scalar_lea.vmem %s28_s28, 16384  ;;  %p2067_p4 = scmp.lt.s32.totalorder %s28_s28, %s28_s28 }
   0x9   :  { %p2063_p3 = scmp.ne.s32.totalorder %s28_s28, %s2062_s14  ;;  %p2068_p5 = scmp.lt.s32.totalorder %s2062_s14, %s2062_s14 }
   0xb   :  { %p2069_p6 = por %p2068_p5, %p2067_p4 }
   0xd   :  { %p2070_p7 = pnand %p2069_p6, %p2063_p3 }
   0xf   :  { %2073 = shalt.err (!%p2070_p7)
}
  0x10   :  { %s2101_s15 = smov 256   ;;  %s2102_s16 = smov 16  }
  0x11   :  { %33 = dma.hbm_to_vmem [thread:$0]  %s2373_s3, 16384, %s28_s28, [#allocation3], %s2101_s15, %s2101_s15, %s2102_s16  }
  0x12   :  { %2096 = dma.done.wait [#allocation3], 16384  }
  0x13   :  { %2097 = vsyncadd [#allocation3], 4294950912  ;;  %v1788_v0 = vld [vmem:[#allocation2 + $0x4] ss:$16 sps:$4 sm:$0xff]   ;;  %v1790_v1 = vld [vmem:[#allocation2] ss:$16 sps:$4 sm:$0xff]  }
  0x14   :  { %433 = vmatprep.subr.bf16.mxu0 %v1788_v0  ;;  %v1791_v2 = vld [vmem:[#allocation2 + $0x24] ss:$16 sps:$4 sm:$0xff]   ;;  %v1793_v3 = vld [vmem:[#allocation2 + $0x20] ss:$16 sps:$4 sm:$0xff]   ;;  %v1799_v5 = vld [vmem:[#allocation2 + $0xc] ss:$16 sps:$4 sm:$0xff]  }
  0x15   :  { %434 = vmatpush1.bf16.msra.mxu0 %v1790_v1  ;;  %v1794_v4 = vld [vmem:[#allocation2 + $0x44] ss:$16 sps:$4 sm:$0xff]   ;;  %v1802_v6 = vld [vmem:[#allocation2 + $0x8] ss:$16 sps:$4 sm:$0xff]   ;;  %v1796_v7 = vld [vmem:[#allocation2 + $0x40] ss:$16 sps:$4 sm:$0xff]   ;;  %474 = vmatprep.subr.bf16.mxu1 %v1799_v5 }
  0x16   :  { %435 = vmatprep.subr.bf16.mxu0 %v1791_v2  ;;  %v1797_v8 = vld [vmem:[#allocation2 + $0x64] ss:$16 sps:$4 sm:$0xff]   ;;  %475 = vmatpush1.bf16.msra.mxu1 %v1802_v6  ;;  %v1805_v9 = vld [vmem:[#allocation2 + $0x2c] ss:$16 sps:$4 sm:$0xff]   ;;  %v1808_v10 = vld [vmem:[#allocation2 + $0x28] ss:$16 sps:$4 sm:$0xff]  }
  0x17   :  { %476 = vmatprep.subr.bf16.mxu1 %v1805_v9  ;;  %v1801_v11 = vld [vmem:[#allocation2 + $0x60] ss:$16 sps:$4 sm:$0xff]   ;;  %v1803_v12 = vld [vmem:[#allocation2 + $0x84] ss:$16 sps:$4 sm:$0xff]   ;;  %v1811_v13 = vld [vmem:[#allocation2 + $0x4c] ss:$16 sps:$4 sm:$0xff]  }
  0x18   :  { %v1814_v14 = vld [vmem:[#allocation2 + $0x48] ss:$16 sps:$4 sm:$0xff]   ;;  %v1817_v15 = vld [vmem:[#allocation2 + $0x6c] ss:$16 sps:$4 sm:$0xff]   ;;  %v1807_v16 = vld [vmem:[#allocation2 + $0x80] ss:$16 sps:$4 sm:$0xff]  }
  0x19   :  { %436 = vmatpush1.bf16.msra.mxu0 %v1793_v3  ;;  %v1809_v17 = vld [vmem:[#allocation2 + $0xa4] ss:$16 sps:$4 sm:$0xff]   ;;  %v1820_v18 = vld [vmem:[#allocation2 + $0x68] ss:$16 sps:$4 sm:$0xff]   ;;  %v1823_v19 = vld [vmem:[#allocation2 + $0x8c] ss:$16 sps:$4 sm:$0xff]  }
  0x1a   :  { %437 = vmatprep.subr.bf16.mxu0 %v1794_v4  ;;  %477 = vmatpush1.bf16.msra.mxu1 %v1808_v10  ;;  %v1813_v20 = vld [vmem:[#allocation2 + $0xa0] ss:$16 sps:$4 sm:$0xff]   ;;  %v1815_v21 = vld [vmem:[#allocation2 + $0xc4] ss:$16 sps:$4 sm:$0xff]   ;;  %v1826_v22 = vld [vmem:[#allocation2 + $0x88] ss:$16 sps:$4 sm:$0xff]  }
  0x1b   :  { %478 = vmatprep.subr.bf16.mxu1 %v1811_v13  ;;  %v1829_v23 = vld [vmem:[#allocation2 + $0xac] ss:$16 sps:$4 sm:$0xff]   ;;  %v1819_v24 = vld [vmem:[#allocation2 + $0xc0] ss:$16 sps:$4 sm:$0xff]   ;;  %v1821_v25 = vld [vmem:[#allocation2 + $0xe4] ss:$16 sps:$4 sm:$0xff]  }
  0x1c   :  { %v1832_v26 = vld [vmem:[#allocation2 + $0xa8] ss:$16 sps:$4 sm:$0xff]   ;;  %v1835_v27 = vld [vmem:[#allocation2 + $0xcc] ss:$16 sps:$4 sm:$0xff]   ;;  %v1825_v28 = vld [vmem:[#allocation2 + $0xe0] ss:$16 sps:$4 sm:$0xff]  }
  0x1d   :  { %438 = vmatpush1.bf16.msra.mxu0 %v1796_v7  ;;  %v1827_v29 = vld [vmem:[#allocation2 + $0x104] ss:$16 sps:$4 sm:$0xff]   ;;  %v1838_v30 = vld [vmem:[#allocation2 + $0xc8] ss:$16 sps:$4 sm:$0xff]   ;;  %v1841_v31 = vld [vmem:[#allocation2 + $0xec] ss:$16 sps:$4 sm:$0xff]  }
  0x1e   :  { %439 = vmatprep.subr.bf16.mxu0 %v1797_v8  ;;  %479 = vmatpush1.bf16.msra.mxu1 %v1814_v14  ;;  %v1831_v32 = vld [vmem:[#allocation2 + $0x100] ss:$16 sps:$4 sm:$0xff]   ;;  %v1833_v33 = vld [vmem:[#allocation2 + $0x124] ss:$16 sps:$4 sm:$0xff]   ;;  %v1844_v34 = vld [vmem:[#allocation2 + $0xe8] ss:$16 sps:$4 sm:$0xff]  }
  0x1f   :  { %480 = vmatprep.subr.bf16.mxu1 %v1817_v15  ;;  %v1847_v35 = vld [vmem:[#allocation2 + $0x10c] ss:$16 sps:$4 sm:$0xff]   ;;  %v1837_v36 = vld [vmem:[#allocation2 + $0x120] ss:$16 sps:$4 sm:$0xff]   ;;  %v1839_v37 = vld [vmem:[#allocation2 + $0x144] ss:$16 sps:$4 sm:$0xff]  }
  0x20   :  { %v1850_v38 = vld [vmem:[#allocation2 + $0x108] ss:$16 sps:$4 sm:$0xff]   ;;  %v1853_v39 = vld [vmem:[#allocation2 + $0x12c] ss:$16 sps:$4 sm:$0xff]   ;;  %v2166_v40 = vld [vmem:[%s2371_s1] sm:$0xff]  ;;  %vm2104_vm0 = vmmov 0  }
  0x21   :  { %440 = vmatpush1.bf16.msra.mxu0 %v1801_v11  ;;  %v1843_v41 = vld [vmem:[#allocation2 + $0x140] ss:$16 sps:$4 sm:$0xff]   ;;  %v112_v42 = vpack.c.bf16 %v2166_v40, %v2166_v40  ;;  %v1845_v43 = vld [vmem:[#allocation2 + $0x164] ss:$16 sps:$4 sm:$0xff]   ;;  %v1856_v44 = vld [vmem:[#allocation2 + $0x128] ss:$16 sps:$4 sm:$0xff]  }
  0x22   :  { %441 = vmatprep.subr.bf16.mxu0 %v1803_v12  ;;  %481 = vmatpush1.bf16.msra.mxu1 %v1820_v18  ;;  %v1859_v45 = vld [vmem:[#allocation2 + $0x14c] ss:$16 sps:$4 sm:$0xff]   ;;  %v1849_v46 = vld [vmem:[#allocation2 + $0x160] ss:$16 sps:$4 sm:$0xff]   ;;  %v1851_v47 = vld [vmem:[#allocation2 + $0x184] ss:$16 sps:$4 sm:$0xff]  }
  0x23   :  { %482 = vmatprep.subr.bf16.mxu1 %v1823_v19  ;;  %465 = vmatprep.mubr.bf16.mxu0 %v112_v42  ;;  %v1862_v48 = vld [vmem:[#allocation2 + $0x148] ss:$16 sps:$4 sm:$0xff]   ;;  %v1865_v49 = vld [vmem:[#allocation2 + $0x16c] ss:$16 sps:$4 sm:$0xff]   ;;  %v1855_v50 = vld [vmem:[#allocation2 + $0x180] ss:$16 sps:$4 sm:$0xff]  }
  0x24   :  { %506 = vmatprep.mubr.bf16.mxu1 %v112_v42  ;;  %v1857_v51 = vld [vmem:[#allocation2 + $0x1a4] ss:$16 sps:$4 sm:$0xff]   ;;  %v1868_v52 = vld [vmem:[#allocation2 + $0x168] ss:$16 sps:$4 sm:$0xff]   ;;  %v1871_v53 = vld [vmem:[#allocation2 + $0x18c] ss:$16 sps:$4 sm:$0xff]  }
  0x25   :  { %442 = vmatpush1.bf16.msra.mxu0 %v1807_v16  ;;  %v1861_v54 = vld [vmem:[#allocation2 + $0x1a0] ss:$16 sps:$4 sm:$0xff]   ;;  %v1863_v55 = vld [vmem:[#allocation2 + $0x1c4] ss:$16 sps:$4 sm:$0xff]   ;;  %v1874_v56 = vld [vmem:[#allocation2 + $0x188] ss:$16 sps:$4 sm:$0xff]  }
  0x26   :  { %443 = vmatprep.subr.bf16.mxu0 %v1809_v17  ;;  %483 = vmatpush1.bf16.msra.mxu1 %v1826_v22  ;;  %v1867_v57 = vld [vmem:[#allocation2 + $0x1c0] ss:$16 sps:$4 sm:$0xff]   ;;  %v1875_v58 = vld [vmem:[#allocation2 + $0x1ac] ss:$16 sps:$4 sm:$0xff]   ;;  %v1869_v59 = vld [vmem:[#allocation2 + $0x1e4] ss:$16 sps:$4 sm:$0xff]  }
  0x27   :  { %484 = vmatprep.subr.bf16.mxu1 %v1829_v23  ;;  %v1877_v60 = vld [vmem:[#allocation2 + $0x1a8] ss:$16 sps:$4 sm:$0xff]   ;;  %v1878_v61 = vld [vmem:[#allocation2 + $0x1cc] ss:$16 sps:$4 sm:$0xff]   ;;  %v1873_v62 = vld [vmem:[#allocation2 + $0x1e0] ss:$16 sps:$4 sm:$0xff]  }
  0x28   :  { %v46_v63 = vld [vmem:[%s2370_s0] sm:$0xff]  ;;  %v1880_v0 = vld [vmem:[#allocation2 + $0x1c8] ss:$16 sps:$4 sm:$0xff]   ;;  %v1881_v2 = vld [vmem:[#allocation2 + $0x1ec] ss:$16 sps:$4 sm:$0xff]  }
  0x29   :  { %444 = vmatpush1.bf16.msra.mxu0 %v1813_v20  ;;  %v1886_v1 = vld [vmem:[#allocation2 + $0x204] ss:$16 sps:$4 sm:$0xff]   ;;  %v1884_v3 = vld [vmem:[#allocation2 + $0x200] ss:$16 sps:$4 sm:$0xff]   ;;  %v111_v4 = vpack.c.bf16 %v46_v63, %v46_v63  ;;  %v1883_v5 = vld [vmem:[#allocation2 + $0x1e8] ss:$16 sps:$4 sm:$0xff]  }
  0x2a   :  { %445 = vmatprep.subr.bf16.mxu0 %v1815_v21  ;;  %485 = vmatpush1.bf16.msra.mxu1 %v1832_v26  ;;  %v1892_v6 = vld [vmem:[#allocation2 + $0x224] ss:$16 sps:$4 sm:$0xff]   ;;  %v1889_v7 = vld [vmem:[#allocation2 + $0x20c] ss:$16 sps:$4 sm:$0xff]   ;;  %v1890_v8 = vld [vmem:[#allocation2 + $0x220] ss:$16 sps:$4 sm:$0xff]  }
  0x2b   :  { %486 = vmatprep.subr.bf16.mxu1 %v1835_v27  ;;  %v1887_v9 = vld [vmem:[#allocation2 + $0x208] ss:$16 sps:$4 sm:$0xff]   ;;  %v1898_v10 = vld [vmem:[#allocation2 + $0x244] ss:$16 sps:$4 sm:$0xff]   ;;  %v1895_v11 = vld [vmem:[#allocation2 + $0x22c] ss:$16 sps:$4 sm:$0xff]  }
  0x2c   :  { %v1896_v12 = vld [vmem:[#allocation2 + $0x240] ss:$16 sps:$4 sm:$0xff]   ;;  %v1893_v13 = vld [vmem:[#allocation2 + $0x228] ss:$16 sps:$4 sm:$0xff]   ;;  %v1904_v14 = vld [vmem:[#allocation2 + $0x264] ss:$16 sps:$4 sm:$0xff]  }
  0x2d   :  { %446 = vmatpush1.bf16.msra.mxu0 %v1819_v24  ;;  %v1901_v15 = vld [vmem:[#allocation2 + $0x24c] ss:$16 sps:$4 sm:$0xff]   ;;  %v1902_v16 = vld [vmem:[#allocation2 + $0x260] ss:$16 sps:$4 sm:$0xff]   ;;  %v1899_v17 = vld [vmem:[#allocation2 + $0x248] ss:$16 sps:$4 sm:$0xff]  }
  0x2e   :  { %447 = vmatprep.subr.bf16.mxu0 %v1821_v25  ;;  %487 = vmatpush1.bf16.msra.mxu1 %v1838_v30  ;;  %v1907_v18 = vld [vmem:[#allocation2 + $0x26c] ss:$16 sps:$4 sm:$0xff]   ;;  %v1905_v19 = vld [vmem:[#allocation2 + $0x268] ss:$16 sps:$4 sm:$0xff]   ;;  %v1910_v20 = vld [vmem:[#allocation2 + $0x284] ss:$16 sps:$4 sm:$0xff]  }
  0x2f   :  { %488 = vmatprep.subr.bf16.mxu1 %v1841_v31  ;;  %v1913_v21 = vld [vmem:[#allocation2 + $0x28c] ss:$16 sps:$4 sm:$0xff]   ;;  %v1908_v22 = vld [vmem:[#allocation2 + $0x280] ss:$16 sps:$4 sm:$0xff]   ;;  %v1911_v23 = vld [vmem:[#allocation2 + $0x288] ss:$16 sps:$4 sm:$0xff]  }
  0x30   :  { %v1916_v24 = vld [vmem:[#allocation2 + $0x2a4] ss:$16 sps:$4 sm:$0xff]   ;;  %v1919_v25 = vld [vmem:[#allocation2 + $0x2ac] ss:$16 sps:$4 sm:$0xff]   ;;  %v1914_v26 = vld [vmem:[#allocation2 + $0x2a0] ss:$16 sps:$4 sm:$0xff]  }
  0x31   :  { %448 = vmatpush1.bf16.msra.mxu0 %v1825_v28  ;;  %v1917_v27 = vld [vmem:[#allocation2 + $0x2a8] ss:$16 sps:$4 sm:$0xff]   ;;  %v1922_v28 = vld [vmem:[#allocation2 + $0x2c4] ss:$16 sps:$4 sm:$0xff]   ;;  %v1920_v30 = vld [vmem:[#allocation2 + $0x2c0] ss:$16 sps:$4 sm:$0xff]  }
  0x32   :  { %449 = vmatprep.subr.bf16.mxu0 %v1827_v29  ;;  %489 = vmatpush1.bf16.msra.mxu1 %v1844_v34  ;;  %v1925_v29 = vld [vmem:[#allocation2 + $0x2cc] ss:$16 sps:$4 sm:$0xff]   ;;  %v1923_v31 = vld [vmem:[#allocation2 + $0x2c8] ss:$16 sps:$4 sm:$0xff]   ;;  %v1926_v34 = vld [vmem:[#allocation2 + $0x2e0] ss:$16 sps:$4 sm:$0xff]  }
  0x33   :  { %490 = vmatprep.subr.bf16.mxu1 %v1847_v35  ;;  %v1929_v35 = vld [vmem:[#allocation2 + $0x2e8] ss:$16 sps:$4 sm:$0xff]   ;;  %v1943_v42 = vld [vmem:[#allocation2 + $0x32c] ss:$16 sps:$4 sm:$0xff]   ;;  %v1968_v63 = vld [vmem:[#allocation2 + $0x3c0] ss:$16 sps:$4 sm:$0xff]  }
  0x35   :  { %450 = vmatpush1.bf16.msra.mxu0 %v1831_v32  ;;  %v1928_v32 = vld [vmem:[#allocation2 + $0x2e4] ss:$16 sps:$4 sm:$0xff]  }
  0x36   :  { %451 = vmatprep.subr.bf16.mxu0 %v1833_v33  ;;  %491 = vmatpush1.bf16.msra.mxu1 %v1850_v38  ;;  %v1931_v33 = vld [vmem:[#allocation2 + $0x2ec] ss:$16 sps:$4 sm:$0xff]   ;;  %v1935_v38 = vld [vmem:[#allocation2 + $0x308] ss:$16 sps:$4 sm:$0xff]  }
  0x37   :  { %492 = vmatprep.subr.bf16.mxu1 %v1853_v39  ;;  %v1937_v39 = vld [vmem:[#allocation2 + $0x30c] ss:$16 sps:$4 sm:$0xff]  }
  0x39   :  { %452 = vmatpush1.bf16.msra.mxu0 %v1837_v36  ;;  %v1934_v36 = vld [vmem:[#allocation2 + $0x304] ss:$16 sps:$4 sm:$0xff]  }
  0x3a   :  { %453 = vmatprep.subr.bf16.mxu0 %v1839_v37  ;;  %493 = vmatpush1.bf16.msra.mxu1 %v1856_v44  ;;  %v1932_v37 = vld [vmem:[#allocation2 + $0x300] ss:$16 sps:$4 sm:$0xff]   ;;  %v1941_v44 = vld [vmem:[#allocation2 + $0x328] ss:$16 sps:$4 sm:$0xff]  }
  0x3b   :  { %494 = vmatprep.subr.bf16.mxu1 %v1859_v45  ;;  %v1946_v45 = vld [vmem:[#allocation2 + $0x344] ss:$16 sps:$4 sm:$0xff]  }
  0x3d   :  { %454 = vmatpush1.bf16.msra.mxu0 %v1843_v41  ;;  %v1940_v41 = vld [vmem:[#allocation2 + $0x324] ss:$16 sps:$4 sm:$0xff]  }
  0x3e   :  { %455 = vmatprep.subr.bf16.mxu0 %v1845_v43  ;;  %495 = vmatpush1.bf16.msra.mxu1 %v1862_v48  ;;  %v1938_v43 = vld [vmem:[#allocation2 + $0x320] ss:$16 sps:$4 sm:$0xff]   ;;  %v1947_v48 = vld [vmem:[#allocation2 + $0x348] ss:$16 sps:$4 sm:$0xff]  }
  0x3f   :  { %496 = vmatprep.subr.bf16.mxu1 %v1865_v49  ;;  %v1952_v49 = vld [vmem:[#allocation2 + $0x364] ss:$16 sps:$4 sm:$0xff]  }
  0x41   :  { %456 = vmatpush1.bf16.msra.mxu0 %v1849_v46  ;;  %v1949_v46 = vld [vmem:[#allocation2 + $0x34c] ss:$16 sps:$4 sm:$0xff]  }
  0x42   :  { %457 = vmatprep.subr.bf16.mxu0 %v1851_v47  ;;  %497 = vmatpush1.bf16.msra.mxu1 %v1868_v52  ;;  %v1944_v47 = vld [vmem:[#allocation2 + $0x340] ss:$16 sps:$4 sm:$0xff]   ;;  %v1953_v52 = vld [vmem:[#allocation2 + $0x368] ss:$16 sps:$4 sm:$0xff]  }
  0x43   :  { %498 = vmatprep.subr.bf16.mxu1 %v1871_v53  ;;  %v1958_v53 = vld [vmem:[#allocation2 + $0x384] ss:$16 sps:$4 sm:$0xff]  }
  0x45   :  { %458 = vmatpush1.bf16.msra.mxu0 %v1855_v50  ;;  %v1955_v50 = vld [vmem:[#allocation2 + $0x36c] ss:$16 sps:$4 sm:$0xff]  }
  0x46   :  { %459 = vmatprep.subr.bf16.mxu0 %v1857_v51  ;;  %499 = vmatpush1.bf16.msra.mxu1 %v1874_v56  ;;  %v1950_v51 = vld [vmem:[#allocation2 + $0x360] ss:$16 sps:$4 sm:$0xff]   ;;  %v1959_v56 = vld [vmem:[#allocation2 + $0x388] ss:$16 sps:$4 sm:$0xff]  }
  0x47   :  { %500 = vmatprep.subr.bf16.mxu1 %v1875_v58  ;;  %v1964_v58 = vld [vmem:[#allocation2 + $0x3a4] ss:$16 sps:$4 sm:$0xff]  }
  0x49   :  { %460 = vmatpush1.bf16.msra.mxu0 %v1861_v54  ;;  %v1961_v54 = vld [vmem:[#allocation2 + $0x38c] ss:$16 sps:$4 sm:$0xff]  }
  0x4a   :  { %461 = vmatprep.subr.bf16.mxu0 %v1863_v55  ;;  %501 = vmatpush1.bf16.msra.mxu1 %v1877_v60  ;;  %v1956_v55 = vld [vmem:[#allocation2 + $0x380] ss:$16 sps:$4 sm:$0xff]   ;;  %v1967_v60 = vld [vmem:[#allocation2 + $0x3ac] ss:$16 sps:$4 sm:$0xff]  }
  0x4b   :  { %502 = vmatprep.subr.bf16.mxu1 %v1878_v61  ;;  %v1970_v61 = vld [vmem:[#allocation2 + $0x3c4] ss:$16 sps:$4 sm:$0xff]  }
  0x4d   :  { %462 = vmatpush1.bf16.msra.mxu0 %v1867_v57  ;;  %v1962_v57 = vld [vmem:[#allocation2 + $0x3a0] ss:$16 sps:$4 sm:$0xff]  }
  0x4e   :  { %463 = vmatprep.subr.bf16.mxu0 %v1869_v59  ;;  %503 = vmatpush1.bf16.msra.mxu1 %v1880_v0  ;;  %v1965_v59 = vld [vmem:[#allocation2 + $0x3a8] ss:$16 sps:$4 sm:$0xff]  }
  0x4f   :  { %504 = vmatprep.subr.bf16.mxu1 %v1881_v2  ;;  %v2176_v0 = vld [vmem:[%s2371_s1 + $0x8] sm:$0xff]  ;;  %v1976_v2 = vld [vmem:[#allocation2 + $0x3e4] ss:$16 sps:$4 sm:$0xff]  }
  0x51   :  { %464 = vmatpush1.bf16.msra.mxu0 %v1873_v62  ;;  %v1973_v62 = vld [vmem:[#allocation2 + $0x3cc] ss:$16 sps:$4 sm:$0xff]  }
  0x52   :  { %950 = vmatprep.subr.bf16.mxu0 %v1886_v1  ;;  %505 = vmatpush1.bf16.msra.mxu1 %v1883_v5  ;;  %v1971_v1 = vld [vmem:[#allocation2 + $0x3c8] ss:$16 sps:$4 sm:$0xff]   ;;  %v1974_v5 = vld [vmem:[#allocation2 + $0x3e0] ss:$16 sps:$4 sm:$0xff]  }
  0x53   :  { %991 = vmatprep.subr.bf16.mxu1 %v1889_v7  ;;  %v2103_v7 = vmov 0.0  }
  0x54   :  { %466 = vmatmul.mubr.bf16.vlgmr.msra.gmra.mrb[0].mxu0 %v111_v4 }
  0x55   :  { %951 = vmatpush1.bf16.msra.mxu0 %v1884_v3  ;;  %507 = vmatmul.mubr.bf16.vlgmr.msra.gmra.mrb[0].mxu1 %v111_v4  ;;  %v629_v3 = vpack.c.bf16 %v2176_v0, %v2176_v0  ;;  %v1979_v4 = vld [vmem:[#allocation2 + $0x3ec] ss:$16 sps:$4 sm:$0xff]  }
  0x56   :  { %952 = vmatprep.subr.bf16.mxu0 %v1892_v6  ;;  %992 = vmatpush1.bf16.msra.mxu1 %v1887_v9  ;;  %v1977_v6 = vld [vmem:[#allocation2 + $0x3e8] ss:$16 sps:$4 sm:$0xff]   ;;  %v1591_v9 = vld [vmem:[%s2375_s5 + $0x4] ss:$0 sm:$0xff] }
  0x57   :  { %993 = vmatprep.subr.bf16.mxu1 %v1895_v11  ;;  %982 = vmatprep.mubr.bf16.mxu0 %v629_v3 }
  0x58   :  { %1023 = vmatprep.mubr.bf16.mxu1 %v629_v3 }
  0x59   :  { %953 = vmatpush1.bf16.msra.mxu0 %v1890_v8  ;;  %v1589_v8 = vld [vmem:[%s2375_s5 + $0x3] ss:$0 sm:$0xff] }
  0x5a   :  { %954 = vmatprep.subr.bf16.mxu0 %v1898_v10  ;;  %994 = vmatpush1.bf16.msra.mxu1 %v1893_v13 }
  0x5b   :  { %995 = vmatprep.subr.bf16.mxu1 %v1901_v15 }
  0x5d   :  { %955 = vmatpush1.bf16.msra.mxu0 %v1896_v12 }
  0x5e   :  { %956 = vmatprep.subr.bf16.mxu0 %v1904_v14  ;;  %996 = vmatpush1.bf16.msra.mxu1 %v1899_v17 }
  0x5f   :  { %997 = vmatprep.subr.bf16.mxu1 %v1907_v18  ;;  %v1594_v18 = vld [vmem:[%s2375_s5 + $0x6] ss:$0 sm:$0xff] }
  0x61   :  { %957 = vmatpush1.bf16.msra.mxu0 %v1902_v16 }
  0x62   :  { %998 = vmatpush1.bf16.msra.mxu1 %v1905_v19  ;;  %958 = vmatprep.subr.bf16.mxu0 %v1910_v20 }
  0x63   :  { %999 = vmatprep.subr.bf16.mxu1 %v1913_v21 }
  0x65   :  { %959 = vmatpush1.bf16.msra.mxu0 %v1908_v22 }
  0x66   :  { %1000 = vmatpush1.bf16.msra.mxu1 %v1911_v23  ;;  %960 = vmatprep.subr.bf16.mxu0 %v1916_v24  ;;  %v1593_v24 = vld [vmem:[%s2375_s5 + $0x5] ss:$0 sm:$0xff] }
  0x67   :  { %1001 = vmatprep.subr.bf16.mxu1 %v1919_v25 }
  0x69   :  { %961 = vmatpush1.bf16.msra.mxu0 %v1914_v26 }
  0x6a   :  { %1002 = vmatpush1.bf16.msra.mxu1 %v1917_v27  ;;  %962 = vmatprep.subr.bf16.mxu0 %v1922_v28 }
  0x6b   :  { %1003 = vmatprep.subr.bf16.mxu1 %v1925_v29 }
  0x6d   :  { %963 = vmatpush1.bf16.msra.mxu0 %v1920_v30 }
  0x6e   :  { %1004 = vmatpush1.bf16.msra.mxu1 %v1923_v31  ;;  %964 = vmatprep.subr.bf16.mxu0 %v1928_v32 }
  0x6f   :  { %1005 = vmatprep.subr.bf16.mxu1 %v1931_v33  ;;  %v44_v33 = vld [vmem:[%s2372_s2] sm:$0xff] }
  0x71   :  { %965 = vmatpush1.bf16.msra.mxu0 %v1926_v34 }
  0x72   :  { %1006 = vmatpush1.bf16.msra.mxu1 %v1929_v35  ;;  %966 = vmatprep.subr.bf16.mxu0 %v1934_v36 }
  0x73   :  { %1007 = vmatprep.subr.bf16.mxu1 %v1937_v39 }
  0x75   :  { %967 = vmatpush1.bf16.msra.mxu0 %v1932_v37 }
  0x76   :  { %1008 = vmatpush1.bf16.msra.mxu1 %v1935_v38  ;;  %968 = vmatprep.subr.bf16.mxu0 %v1940_v41 }
  0x77   :  { %1009 = vmatprep.subr.bf16.mxu1 %v1943_v42 }
  0x79   :  { %969 = vmatpush1.bf16.msra.mxu0 %v1938_v43 }
  0x7a   :  { %1010 = vmatpush1.bf16.msra.mxu1 %v1941_v44  ;;  %970 = vmatprep.subr.bf16.mxu0 %v1946_v45  ;;  %v1980_v44 = vld [vmem:[%s2374_s4] sm:$0xff]  }
  0x7b   :  { %1011 = vmatprep.subr.bf16.mxu1 %v1949_v46  ;;  %v1981_v46 = vld [vmem:[%s2374_s4 + $0x8] sm:$0xff]  }
  0x7d   :  { %971 = vmatpush1.bf16.msra.mxu0 %v1944_v47  ;;  %v1982_v47 = vld [vmem:[%s2374_s4 + $0x10] sm:$0xff]  }
  0x7e   :  { %1012 = vmatpush1.bf16.msra.mxu1 %v1947_v48  ;;  %972 = vmatprep.subr.bf16.mxu0 %v1952_v49  ;;  %v1983_v48 = vld [vmem:[%s2374_s4 + $0x18] sm:$0xff]   ;;  %v1984_v49 = vld [vmem:[%s2374_s4 + $0x20] sm:$0xff]  }
  0x7f   :  { %1013 = vmatprep.subr.bf16.mxu1 %v1955_v50  ;;  %v1985_v50 = vld [vmem:[%s2374_s4 + $0x28] sm:$0xff]  }
  0x81   :  { %973 = vmatpush1.bf16.msra.mxu0 %v1950_v51  ;;  %v1986_v51 = vld [vmem:[%s2374_s4 + $0x30] sm:$0xff]  }
  0x82   :  { %1014 = vmatpush1.bf16.msra.mxu1 %v1953_v52  ;;  %974 = vmatprep.subr.bf16.mxu0 %v1958_v53  ;;  %v1987_v52 = vld [vmem:[%s2374_s4 + $0x38] sm:$0xff]   ;;  %v1096_v53 = vpack.c.bf16 %v2176_v0, %v2166_v40 }
  0x83   :  { %1015 = vmatprep.subr.bf16.mxu1 %v1961_v54  ;;  %v1660_v54 = vld [vmem:[%s2375_s5 + $0x7] ss:$0 sm:$0xff] }
  0x85   :  { %975 = vmatpush1.bf16.msra.mxu0 %v1956_v55  ;;  %v1662_v55 = vld [vmem:[%s2375_s5 + $0x8] ss:$0 sm:$0xff] }
  0x86   :  { %1016 = vmatpush1.bf16.msra.mxu1 %v1959_v56  ;;  %976 = vmatprep.subr.bf16.mxu0 %v1964_v58 }
  0x87   :  { %1017 = vmatprep.subr.bf16.mxu1 %v1967_v60 }
  0x89   :  { %977 = vmatpush1.bf16.msra.mxu0 %v1962_v57 }
  0x8a   :  { %1018 = vmatpush1.bf16.msra.mxu1 %v1965_v59  ;;  %978 = vmatprep.subr.bf16.mxu0 %v1970_v61 }
  0x8b   :  { %1019 = vmatprep.subr.bf16.mxu1 %v1973_v62 }
  0x8d   :  { %979 = vmatpush1.bf16.msra.mxu0 %v1968_v63 }
  0x8e   :  { %1020 = vmatpush1.bf16.msra.mxu1 %v1971_v1  ;;  %980 = vmatprep.subr.bf16.mxu0 %v1976_v2 }
  0x8f   :  { %1021 = vmatprep.subr.bf16.mxu1 %v1979_v4 }
  0x91   :  { %981 = vmatpush1.bf16.msra.mxu0 %v1974_v5  ;;  %v1665_v5 = vld [vmem:[%s2375_s5 + $0xa] ss:$0 sm:$0xff] }
  0x92   :  { %1022 = vmatpush1.bf16.msra.mxu1 %v1977_v6  ;;  %1742 = vmatprep.subr.bf16.mxu0 %v2103_v7 }
 0x127   :  { %v467_v10 = vpop.f32.mrb[0].mxu0 }
 0x128   :  { %v520_v11 = vadd.f32 %v1589_v8, %v467_v10  ;;  %v469_v12 = vpop.f32.mrb[1].mxu0  ;;  %v508_v19 = vpop.f32.mrb[0].mxu1  ;;  %v1664_v8 = vld [vmem:[%s2375_s5 + $0x9] ss:$0 sm:$0xff] }
 0x129   :  { %v532_v13 = vadd.f32 %v1591_v9, %v469_v12  ;;  %v471_v14 = vpop.f32.mrb[2].mxu0  ;;  %v510_v20 = vpop.f32.mrb[1].mxu1  ;;  %v544_v26 = vadd.f32 %v1593_v24, %v508_v19 }
 0x12a   :  { %v1590_v15 = vmul.f32 -1.442695, %v520_v11  ;;  %v472_v16 = vpop.f32.mrb[3].mxu0  ;;  %v551_v21 = vadd.f32 %v1594_v18, %v510_v20  ;;  %v512_v22 = vpop.f32.mrb[2].mxu1 }
 0x12b   :  { %v1592_v17 = vmul.f32 -1.442695, %v532_v13  ;;  %v513_v23 = vpop.f32.mrb[3].mxu1 }
 0x12c   :  { %2012 = vpow2.f32 %v1590_v15  ;;  %v1595_v25 = vmul.f32 -1.442695, %v551_v21 }
 0x12d   :  { %2014 = vpow2.f32 %v1592_v17 }
 0x12e   :  { %2016 = vpow2.f32 %v1595_v25 }
 0x12f   :  { %2018 = vtanh.f32 %v544_v26 }
 0x136   :  { %v2013_v27 = vpop.eup %2012 }
 0x137   :  { %v2015_v28 = vpop.eup %2014  ;;  %v524_v29 = vadd.f32 1.0, %v2013_v27 }
 0x138   :  { %v536_v30 = vadd.f32 1.0, %v2015_v28  ;;  %v2017_v31 = vpop.eup %2016  ;;  %v1667_v28 = vld [vmem:[%s2375_s5] ss:$0 sm:$0xff] }
 0x139   :  { %2020 = vrcp.f32 %v524_v29  ;;  %v2019_v32 = vpop.eup %2018  ;;  %v555_v35 = vadd.f32 1.0, %v2017_v31 }
 0x13a   :  { %2022 = vrcp.f32 %v536_v30 }
 0x13b   :  { %2024 = vrcp.f32 %v555_v35 }
 0x143   :  { %v2021_v34 = vpop.eup %2020 }
 0x144   :  { %v2023_v36 = vpop.eup %2022  ;;  %v559_v37 = vmul.f32 %v2021_v34, %v2019_v32 }
 0x145   :  { %v558_v38 = vmul.f32 %v2023_v36, %v44_v33  ;;  %v2025_v41 = vpop.eup %2024  ;;  %v1988_v36 = vld [vmem:[%s2374_s4 + $0x80] sm:$0xff]  }
 0x146   :  { %1711 = vmatprep.subr.bf16.mxu1 %v1988_v36 }
 0x147   :  { %v560_v39 = vadd.f32 %v559_v37, %v558_v38  ;;  %v1989_v37 = vld [vmem:[%s2374_s4 + $0x40] sm:$0xff]   ;;  %v1990_v38 = vld [vmem:[%s2374_s4 + $0x88] sm:$0xff]  }
 0x149   :  { %2026 = vtanh.f32 %v560_v39  ;;  %1500 = vst [vmem:[%s2378_s8] sm:$0xff] %v560_v39  ;;  %v1991_v39 = vld [vmem:[%s2374_s4 + $0x48] sm:$0xff]  }
 0x150   :  { %v45_v17 = vld [vmem:[%s2372_s2 + $0x8] sm:$0xff] }
 0x153   :  { %v2027_v42 = vpop.eup %2026 }
 0x154   :  { %v562_v43 = vmul.f32 %v2027_v42, %v2025_v41  ;;  %v1992_v41 = vld [vmem:[%s2374_s4 + $0x90] sm:$0xff]  }
 0x155   :  { %v1993_v42 = vld [vmem:[%s2374_s4 + $0x50] sm:$0xff]  }
 0x156   :  { %v628_v45 = vpack.c.bf16 %v562_v43, %v562_v43  ;;  %1498 = vst [vmem:[%s2377_s7] sm:$0xff] %v562_v43  ;;  %v1994_v43 = vld [vmem:[%s2374_s4 + $0x98] sm:$0xff]  }
 0x158   :  { %983 = vmatmul.mubr.bf16.vlgmr.msra.gmra.mrb[4].mxu0 %v628_v45  ;;  %1024 = vmatmul.mubr.bf16.vlgmr.msra.gmra.mrb[4].mxu1 %v628_v45  ;;  %v1996_v45 = vld [vmem:[%s2374_s4 + $0xa0] sm:$0xff]  }
 0x159   :  { %1743 = vmatpush3.bf16.msra.mxu0 %v1980_v44  ;;  %1758 = vmatprep.mubr.msk.bf16.mxu0 %vm2104_vm0, %v2103_v7  ;;  %v1995_v44 = vld [vmem:[%s2374_s4 + $0x58] sm:$0xff]  }
 0x15a   :  { %1744 = vmatprep.subr.bf16.mxu0 %v2103_v7  ;;  %1712 = vmatpush3.bf16.msra.mxu1 %v1989_v37 }
 0x15b   :  { %1713 = vmatprep.subr.bf16.mxu1 %v1990_v38 }
 0x15d   :  { %1745 = vmatpush3.bf16.msra.mxu0 %v1981_v46  ;;  %v1997_v46 = vld [vmem:[%s2374_s4 + $0x60] sm:$0xff]  }
 0x15e   :  { %1746 = vmatprep.subr.bf16.mxu0 %v2103_v7  ;;  %1714 = vmatpush3.bf16.msra.mxu1 %v1991_v39 }
 0x15f   :  { %1715 = vmatprep.subr.bf16.mxu1 %v1992_v41 }
 0x161   :  { %1747 = vmatpush3.bf16.msra.mxu0 %v1982_v47  ;;  %v1998_v47 = vld [vmem:[%s2374_s4 + $0xa8] sm:$0xff]  }
 0x162   :  { %1748 = vmatprep.subr.bf16.mxu0 %v2103_v7  ;;  %1716 = vmatpush3.bf16.msra.mxu1 %v1993_v42 }
 0x163   :  { %1717 = vmatprep.subr.bf16.mxu1 %v1994_v43 }
 0x165   :  { %1749 = vmatpush3.bf16.msra.mxu0 %v1983_v48  ;;  %v1999_v48 = vld [vmem:[%s2374_s4 + $0x68] sm:$0xff]  }
 0x166   :  { %1750 = vmatprep.subr.bf16.mxu0 %v2103_v7  ;;  %1718 = vmatpush3.bf16.msra.mxu1 %v1995_v44 }
 0x167   :  { %1719 = vmatprep.subr.bf16.mxu1 %v1996_v45 }
 0x169   :  { %1751 = vmatpush3.bf16.msra.mxu0 %v1984_v49  ;;  %v2000_v49 = vld [vmem:[%s2374_s4 + $0xb0] sm:$0xff]  }
 0x16a   :  { %1752 = vmatprep.subr.bf16.mxu0 %v2103_v7  ;;  %1720 = vmatpush3.bf16.msra.mxu1 %v1997_v46 }
 0x16b   :  { %1721 = vmatprep.subr.bf16.mxu1 %v1998_v47 }
 0x16d   :  { %1753 = vmatpush3.bf16.msra.mxu0 %v1985_v50  ;;  %v2001_v50 = vld [vmem:[%s2374_s4 + $0x70] sm:$0xff]  }
 0x16e   :  { %1754 = vmatprep.subr.bf16.mxu0 %v2103_v7  ;;  %1722 = vmatpush3.bf16.msra.mxu1 %v1999_v48 }
 0x16f   :  { %1723 = vmatprep.subr.bf16.mxu1 %v2000_v49 }
 0x171   :  { %1755 = vmatpush3.bf16.msra.mxu0 %v1986_v51  ;;  %v2002_v51 = vld [vmem:[%s2374_s4 + $0xb8] sm:$0xff]  }
 0x172   :  { %1756 = vmatprep.subr.bf16.mxu0 %v2103_v7  ;;  %1724 = vmatpush3.bf16.msra.mxu1 %v2001_v50 }
 0x173   :  { %1725 = vmatprep.subr.bf16.mxu1 %v2002_v51 }
 0x175   :  { %1757 = vmatpush3.bf16.msra.mxu0 %v1987_v52  ;;  %v2003_v52 = vld [vmem:[%s2374_s4 + $0x78] sm:$0xff]  }
 0x176   :  { %1762 = vmatprep.subr.bf16.mxu0 %v2103_v7  ;;  %1726 = vmatpush3.bf16.msra.mxu1 %v2003_v52 }
 0x178   :  { %1759 = vmatmul.mubr.bf16.vlgmr.msra.gmra.mrb[8].mxu0 %v1096_v53  ;;  %v2004_v53 = vld [vmem:[%s2374_s4 + $0xc0] sm:$0xff]  }
 0x179   :  { %1778 = vmatprep.mubr.msk.bf16.mxu0 %vm2104_vm0, %v2103_v7  ;;  %1763 = vmatpush3.bf16.msra.mxu0 %v2004_v53 }
 0x17a   :  { %1764 = vmatprep.subr.bf16.mxu0 %v2103_v7 }
 0x22b   :  { %v984_v56 = vpop.f32.mrb[4].mxu0  ;;  %v1025_v57 = vpop.f32.mrb[4].mxu1 }
 0x22c   :  { %v1037_v58 = vadd.f32 %v1660_v54, %v984_v56  ;;  %v986_v59 = vpop.f32.mrb[5].mxu0  ;;  %v1027_v60 = vpop.f32.mrb[5].mxu1  ;;  %v1061_v10 = vadd.f32 %v1664_v8, %v1025_v57  ;;  %v2005_v54 = vld [vmem:[%s2374_s4 + $0xc8] sm:$0xff]  }
 0x22d   :  { %v1049_v61 = vadd.f32 %v1662_v55, %v986_v59  ;;  %v988_v62 = vpop.f32.mrb[6].mxu0  ;;  %v1029_v63 = vpop.f32.mrb[6].mxu1  ;;  %v1068_v6 = vadd.f32 %v1665_v5, %v1027_v60  ;;  %1765 = vmatpush3.bf16.msra.mxu0 %v2005_v54  ;;  %v2006_v55 = vld [vmem:[%s2374_s4 + $0xd0] sm:$0xff]  }
 0x22e   :  { %v1661_v1 = vmul.f32 -1.442695, %v1037_v58  ;;  %v989_v2 = vpop.f32.mrb[7].mxu0  ;;  %v1030_v3 = vpop.f32.mrb[7].mxu1  ;;  %1766 = vmatprep.subr.bf16.mxu0 %v2103_v7 }
 0x22f   :  { %v1663_v4 = vmul.f32 -1.442695, %v1049_v61  ;;  %v1666_v9 = vmul.f32 -1.442695, %v1068_v6 }
 0x230   :  { %2028 = vpow2.f32 %v1661_v1 }
 0x231   :  { %2030 = vpow2.f32 %v1663_v4  ;;  %1767 = vmatpush3.bf16.msra.mxu0 %v2006_v55 }
 0x232   :  { %2032 = vpow2.f32 %v1666_v9  ;;  %1768 = vmatprep.subr.bf16.mxu0 %v2103_v7 }
 0x233   :  { %2034 = vtanh.f32 %v1061_v10 }
 0x23a   :  { %v2029_v11 = vpop.eup %2028 }
 0x23b   :  { %v2031_v12 = vpop.eup %2030  ;;  %v1041_v13 = vadd.f32 1.0, %v2029_v11 }
 0x23c   :  { %v1053_v14 = vadd.f32 1.0, %v2031_v12  ;;  %v2033_v15 = vpop.eup %2032  ;;  %v2007_v12 = vld [vmem:[%s2374_s4 + $0xd8] sm:$0xff]  }
 0x23d   :  { %2036 = vrcp.f32 %v1041_v13  ;;  %v2035_v16 = vpop.eup %2034  ;;  %v1072_v21 = vadd.f32 1.0, %v2033_v15  ;;  %1769 = vmatpush3.bf16.msra.mxu0 %v2007_v12  ;;  %v2010_v13 = vld [vmem:[%s2374_s4 + $0xf0] sm:$0xff]  }
 0x23e   :  { %2038 = vrcp.f32 %v1053_v14  ;;  %1770 = vmatprep.subr.bf16.mxu0 %v2103_v7  ;;  %v2011_v14 = vld [vmem:[%s2374_s4 + $0xf8] sm:$0xff]  }
 0x23f   :  { %2040 = vrcp.f32 %v1072_v21 }
 0x247   :  { %v2037_v18 = vpop.eup %2036 }
 0x248   :  { %v2039_v19 = vpop.eup %2038  ;;  %v1076_v20 = vmul.f32 %v2037_v18, %v2035_v16  ;;  %v1676_v16 = vld [vmem:[%s2375_s5 + $0x1] ss:$0 sm:$0xff] }
 0x249   :  { %v1075_v22 = vmul.f32 %v2039_v19, %v45_v17  ;;  %v2041_v29 = vpop.eup %2040 }
 0x24b   :  { %v1077_v23 = vadd.f32 %v1076_v20, %v1075_v22  ;;  %v1184_v24 = vpop.f32.mrb[8].mxu0 }
 0x24c   :  { %v1760_v25 = vpop.f32.mrb[9].mxu0  ;;  %v1185_v30 = vadd.f32 %v1667_v28, %v1184_v24 }
 0x24d   :  { %1501 = vst [vmem:[%s2378_s8 + $0x8] sm:$0xff] %v1077_v23  ;;  %v1187_v26 = vpop.f32.mrb[10].mxu0  ;;  %2042 = vtanh.f32 %v1077_v23 }
 0x24e   :  { %v1761_v27 = vpop.f32.mrb[11].mxu0  ;;  %v1188_v31 = vadd.f32 %v1667_v28, %v1187_v26 }
 0x257   :  { %v2043_v32 = vpop.eup %2042 }
 0x258   :  { %v2261_v33 = vmul.f32 %v2043_v32, %v2041_v29 }
 0x25a   :  { %v1191_v34 = vmul.f32 %v1185_v30, %v2261_v33  ;;  %1499 = vst [vmem:[%s2377_s7 + $0x8] sm:$0xff] %v2261_v33  ;;  %v1192_v35 = vmul.f32 %v1188_v31, %v2261_v33  ;;  %v1243_v11 = vpack.c.bf16 %v2261_v33, %v2261_v33 }
 0x25c   :  { %1193 = vadd.xlane.f32.xlu0 %v1191_v34 }
 0x260   :  { %1195 = vadd.xlane.f32.xlu0 %v1192_v35 }
 0x2e9   :  { %v1194_v56 = vpop.xlane.xlu0 %1193 }
 0x2ed   :  { %v1196_v57 = vpop.xlane.xlu0 %1195 }
 0x2ee   :  { %v1197_v58 = vmax.f32 %v1194_v56, %v1196_v57 }
 0x2f0   :  { %v1198_v59 = vsub.f32 %v1194_v56, %v1197_v58  ;;  %v1199_v60 = vsub.f32 %v1196_v57, %v1197_v58 }
 0x2f2   :  { %v1200_v61 = vmul.f32 1.442695, %v1198_v59  ;;  %v1202_v62 = vmul.f32 1.442695, %v1199_v60 }
 0x2f4   :  { %2044 = vpow2.f32 %v1200_v61 }
 0x2f5   :  { %2046 = vpow2.f32 %v1202_v62 }
 0x2fe   :  { %v2045_v63 = vpop.eup %2044 }
 0x2ff   :  { %v2047_v1 = vpop.eup %2046 }
 0x300   :  { %v1204_v2 = vadd.f32 %v2047_v1, %v2045_v63 }
 0x302   :  { %2048 = vrcp.f32 %v1204_v2 }
 0x30c   :  { %v2049_v3 = vpop.eup %2048 }
 0x30d   :  { %v1206_v4 = vmul.f32 %v2049_v3, %v2045_v63  ;;  %v1207_v5 = vmul.f32 %v2049_v3, %v2047_v1 }
 0x30f   :  { %v1208_v6 = vmul.f32 %v1206_v4, %v2166_v40  ;;  %v1209_v8 = vmul.f32 %v1207_v5, %v2176_v0  ;;  %v2008_v40 = vld [vmem:[%s2374_s4 + $0xe0] sm:$0xff]   ;;  %v2009_v0 = vld [vmem:[%s2374_s4 + $0xe8] sm:$0xff]   ;;  %s2105_s4 = smov [#allocation5]  }
 0x310   :  { %1771 = vmatpush3.bf16.msra.mxu0 %v2008_v40  ;;  %s1508_s17 = sshll.u32 %s2105_s4, 4  ;;  %s1509_s17 = int_to_ptr.vmem [resolvable:$true] %s1508_s17 }
 0x311   :  { %v1210_v9 = vadd.f32 %v1209_v8, %v1208_v6  ;;  %1772 = vmatprep.subr.bf16.mxu0 %v2103_v7  ;;  %s2074_s18 = scalar_lea.vmem %s1509_s17, 128  ;;  %p2079_p9 = scmp.lt.s32.totalorder %s1509_s17, %s1509_s17 }
 0x312   :  { %p2075_p8 = scmp.ne.s32.totalorder %s1509_s17, %s2074_s18  ;;  %p2080_p10 = scmp.lt.s32.totalorder %s2074_s18, %s2074_s18 }
 0x313   :  { %v1244_v10 = vpack.c.bf16 %v1210_v9, %v1210_v9 }
 0x314   :  { %1773 = vmatpush3.bf16.msra.mxu0 %v2009_v0  ;;  %p2081_p11 = por %p2080_p10, %p2079_p9 }
 0x315   :  { %1378 = vmatprep.mubr.bf16.mxu1 %v1244_v10  ;;  %1774 = vmatprep.subr.bf16.mxu0 %v2103_v7 }
 0x316   :  { %1379 = vmatmul.mubr.bf16.vlgmr.msra.gmra.mrb[8].mxu1 %v1243_v11  ;;  %p2082_p12 = pnand %p2081_p11, %p2075_p8 }
 0x318   :  { %1775 = vmatpush3.bf16.msra.mxu0 %v2010_v13 }
 0x319   :  { %1776 = vmatprep.subr.bf16.mxu0 %v2103_v7  ;;  %v1693_v7 = vld [vmem:[%s2375_s5 + $0x2] ss:$0 sm:$0xff] }
 0x31c   :  { %1777 = vmatpush3.bf16.msra.mxu0 %v2011_v14 }
 0x3e9   :  { %v1727_v15 = vpop.f32.mrb[8].mxu1 }
 0x3ea   :  { %v1728_v17 = vpop.f32.mrb[9].mxu1 }
 0x3eb   :  { %v1729_v18 = vadd.f32 %v1728_v17, %v1727_v15  ;;  %v1730_v19 = vpop.f32.mrb[10].mxu1 }
 0x3ec   :  { %v1731_v20 = vpop.f32.mrb[11].mxu1 }
 0x3ed   :  { %v1381_v21 = vadd.f32 %v1729_v18, %v1676_v16 }
 0x3ef   :  { %2050 = vtanh.f32 %v1381_v21 }
 0x3f9   :  { %v2051_v22 = vpop.eup %2050 }
 0x3fa   :  { %v1403_v23 = vpack.c.bf16 %v2051_v22, %v2051_v22 }
 0x3fc   :  { %1779 = vmatmul.mubr.bf16.vlgmr.msra.gmra.mrb[12].mxu0 %v1403_v23 }
 0x4cf   :  { %v1491_v24 = vpop.f32.mrb[12].mxu0 }
 0x4d0   :  { %v1492_v25 = vadd.f32 %v1693_v7, %v1491_v24  ;;  %v1780_v26 = vpop.f32.mrb[13].mxu0 }
 0x4d1   :  { %v1494_v27 = vpop.f32.mrb[14].mxu0 }
 0x4d2   :  { %1497 = vst [vmem:[#allocation5] sm:$0xff] %v1492_v25  ;;  %v1781_v28 = vpop.f32.mrb[15].mxu0 }
 0x4d3   :  { %2085 = shalt.err (!%p2082_p12)
}
 0x4d4   :  { %s2086_s5 = scalar_lea.hbm %s2376_s6, 128 }
 0x4d5   :  { %p2087_p13 = scmp.ne.s32.totalorder %s2376_s6, %s2086_s5  ;;  %p2090_p0 = scmp.lt.u32.totalorder %s2086_s5, %s2376_s6 }
 0x4d7   :  { %p2092_p1 = pnand %p2090_p0, %p2087_p13 }
 0x4d9   :  { %2095 = shalt.err (!%p2092_p1)
}
 0x4da   :  { %1511 = dma.vmem_to_hbm [thread:$0]  %s1509_s17, 128, %s2376_s6, [#allocation4]  }
 0x4db   :  { %2098 = dma.done.wait [#allocation4], 128  }
 0x4dc   :  { %2099 = vsyncadd [#allocation4], 4294967168 }
 0x4dd   :  { %1523 = vsyncpa [#allocation3], 1 }
 0x4de   :  { %1524 = vsyncpa [#allocation4], 1 }

</bundles_post_ra>
